<compile_context>
chip_gen: v7x
topology: tpu7x:2x2x1
jax: 0.10.0
libtpu: 0.0.40
codegen_flags: <defaults>
</compile_context>

<pallas_src>
import functools

import jax
import jax.numpy as jnp
import numpy as np
from jax.experimental import pallas as pl
from jax.experimental.pallas import tpu as pltpu


def _embed_kernel(patch_ref, w_ref, add_ref, tok_ref, out_ref):
    # patch_ref: (Bt, num_patches, K)        bf16
    # w_ref:     (K, hidden)                 bf16  (resident across the grid)
    # add_ref:   (num_patches, hidden)       f32   (= pos_emb[2:] + conv_bias)
    # tok_ref:   (2, hidden)                 f32   (= pos_emb[:2] + [cls; dist])
    # out_ref:   (Bt, num_patches + 2, hidden)
    bt = patch_ref.shape[0]
    tok = tok_ref[...]
    w = w_ref[...]
    add = add_ref[...]
    # Small static loop over the batch tile: plain 2-D matmuls, no reshapes
    # across the non-8-aligned num_patches dim (avoids VMEM relayout copies).
    for i in range(bt):
        pe = jnp.dot(patch_ref[i], w, preferred_element_type=jnp.float32)
        out_ref[i, :2, :] = tok.astype(out_ref.dtype)
        out_ref[i, 2:, :] = (pe + add).astype(out_ref.dtype)


def _tpu_kind():
    try:
        return jax.devices()[0].device_kind.lower()
    except Exception:
        return ""


def _vmem_policy(kind):
    """Returns (tile-sizing budget bytes, vmem_limit_bytes, min grid steps)."""
    if "v6" in kind:
        # 128 MiB physical VMEM: allow big batch tiles, raise the scoped limit.
        return 64 << 20, 96 << 20, 2
    if "v5" in kind:
        # v5e default scoped limit is 16 MiB; keep the footprint well under it.
        return 13 << 20, 64 << 20, 2
    # v7x (64 MiB physical, 2 TensorCores) or unknown: conservative budget and
    # at least 4 grid steps so megacore + double-buffering both have work.
    return 28 << 20, 48 << 20, 4


def _pick_batch_tile(batch, num_patches, seq_len, K, hidden, out_itemsize,
                     budget_bytes, min_steps):
    """Largest batch tile that divides `batch`, fits the VMEM budget (double-
    buffered per-step I/O + resident weight/add/token slabs), and leaves at
    least `min_steps` grid steps for pipelining / megacore."""
    resident = K * hidden * 2 + num_patches * hidden * 4 + 2 * hidden * 4
    bt = 1
    for cand in (32, 16, 8, 4, 2, 1):
        if batch % cand:
            continue
        per_step = (cand * num_patches * K * 2          # bf16 patches in
                    + cand * seq_len * hidden * out_itemsize)  # out
        if 2 * per_step + 2 * resident <= budget_bytes:
            bt = cand
            break
    max_bt = max(1, batch // min(min_steps, batch))
    bt = min(bt, max_bt)
    while batch % bt:
        bt -= 1
    return bt


@functools.partial(jax.jit, static_argnames=("patch_size", "out_dtype"))
def deit_embeddings(pixel_values, conv_weight, conv_bias, cls_token,
                    distillation_token, position_embeddings, *, patch_size,
                    out_dtype=None):
    """pixel_values: (B, C, H, W) float32 (NCHW, like torch).
       conv_weight:  (hidden, C, P, P) (torch Conv2d layout).
       conv_bias:    (hidden,)
       cls_token / distillation_token: (1, 1, hidden)
       position_embeddings: (1, num_patches + 2, hidden)
       out_dtype: optional output dtype (e.g. jnp.bfloat16 for bf16 consumers);
                  defaults to pixel_values.dtype to match the torch forward.
    """
    B, C, H, W = pixel_values.shape
    P = patch_size
    hidden = conv_weight.shape[0]
    nh, nw = H // P, W // P
    num_patches = nh * nw
    seq_len = num_patches + 2
    K = C * P * P
    out_dtype = jnp.dtype(out_dtype) if out_dtype is not None else pixel_values.dtype

    # --- glue: cast to bf16 FIRST so the materialized patches intermediate is
    # bf16, then extract non-overlapping patches (conv stride == kernel size).
    x = pixel_values.astype(jnp.bfloat16).reshape(B, C, nh, P, nw, P)
    x = jnp.transpose(x, (0, 2, 4, 1, 3, 5))                      # (B, nh, nw, C, P, P)
    patches = x.reshape(B, num_patches, K)                        # (B, num_patches, K) bf16

    w_mat = conv_weight.reshape(hidden, K).T.astype(jnp.bfloat16)  # (K, hidden) bf16

    pos = position_embeddings.reshape(seq_len, hidden).astype(jnp.float32)
    # Fold conv bias into the patch rows, cls/dist tokens into the token rows.
    add_patch = pos[2:] + conv_bias.astype(jnp.float32)[None, :]   # (num_patches, hidden)
    token_rows = pos[:2] + jnp.concatenate(
        [cls_token.reshape(1, hidden), distillation_token.reshape(1, hidden)],
        axis=0).astype(jnp.float32)                                # (2, hidden)

    # TODO(synk): bool_masked_pos / mask_token path (use_mask_token) not implemented;
    # the torch forward default (bool_masked_pos=None) is reproduced exactly.

    kind = _tpu_kind()
    budget, vmem_limit, min_steps = _vmem_policy(kind)
    bt = _pick_batch_tile(B, num_patches, seq_len, K, hidden,
                          out_dtype.itemsize, budget, min_steps)
    grid = (B // bt,)

    cost = pl.CostEstimate(
        flops=2 * B * num_patches * K * hidden,
        transcendentals=0,
        bytes_accessed=(patches.size * 2 + w_mat.size * 2
                        + add_patch.size * 4 + token_rows.size * 4
                        + B * seq_len * hidden * out_dtype.itemsize),
    )

    out = pl.pallas_call(
        _embed_kernel,
        out_shape=jax.ShapeDtypeStruct((B, seq_len, hidden), out_dtype),
        grid_spec=pltpu.PrefetchScalarGridSpec(
            num_scalar_prefetch=0,
            grid=grid,
            in_specs=[
                pl.BlockSpec((bt, num_patches, K), lambda b: (b, 0, 0)),
                pl.BlockSpec((K, hidden), lambda b: (0, 0)),
                pl.BlockSpec((num_patches, hidden), lambda b: (0, 0)),
                pl.BlockSpec((2, hidden), lambda b: (0, 0)),
            ],
            out_specs=pl.BlockSpec((bt, seq_len, hidden), lambda b: (b, 0, 0)),
        ),
        compiler_params=pltpu.CompilerParams(
            dimension_semantics=("parallel",),
            vmem_limit_bytes=vmem_limit),
        cost_estimate=cost,
    )(patches, w_mat, add_patch, token_rows)

    return out                                                    # (B, seq_len, hidden)


def _reference(pixel_values, conv_weight, conv_bias, cls_token,
               distillation_token, position_embeddings, patch_size):
    """Pure-JAX f32 reference (conv as dot_general) for correctness check."""
    B, C, H, W = pixel_values.shape
    P = patch_size
    hidden = conv_weight.shape[0]
    nh, nw = H // P, W // P
    x = pixel_values.reshape(B, C, nh, P, nw, P)
    x = jnp.transpose(x, (0, 2, 4, 1, 3, 5)).reshape(B, nh * nw, C * P * P)
    pe = jnp.einsum("bpk,hk->bph", x, conv_weight.reshape(hidden, -1)) + conv_bias
    cls = jnp.broadcast_to(cls_token, (B, 1, hidden))
    dist = jnp.broadcast_to(distillation_token, (B, 1, hidden))
    emb = jnp.concatenate([cls, dist, pe], axis=1)
    return emb + position_embeddings


if __name__ == "__main__":
    # Small config: batch=2, channels=4, image=16x16, patch=8, hidden=32
    B, C, IMG, P, HID = 2, 4, 16, 8, 32
    num_patches = (IMG // P) * (IMG // P)
    seq_len = num_patches + 2

    key = jax.random.PRNGKey(0)
    k0, k1, k2, k3, k4, k5 = jax.random.split(key, 6)

    pixel_values = jax.random.normal(k0, (B, C, IMG, IMG), dtype=jnp.float32)
    conv_weight = jax.random.normal(k1, (HID, C, P, P), dtype=jnp.float32) * 0.02
    conv_bias = jax.random.normal(k2, (HID,), dtype=jnp.float32) * 0.02
    cls_token = jax.random.normal(k3, (1, 1, HID), dtype=jnp.float32) * 0.02
    distillation_token = jax.random.normal(k4, (1, 1, HID), dtype=jnp.float32) * 0.02
    position_embeddings = jax.random.normal(k5, (1, seq_len, HID), dtype=jnp.float32) * 0.02

    out = deit_embeddings(pixel_values, conv_weight, conv_bias, cls_token,
                          distillation_token, position_embeddings, patch_size=P)
    out = jax.block_until_ready(out)

    ref = _reference(pixel_values, conv_weight, conv_bias, cls_token,
                     distillation_token, position_embeddings, patch_size=P)
    assert out.shape == (B, seq_len, HID), out.shape
    # bf16 inputs with f32 accumulation vs f32 reference -> looser tolerance.
    np.testing.assert_allclose(np.asarray(out), np.asarray(ref), rtol=2e-2, atol=2e-2)
    print("KERNEL_OK")
</pallas_src>

<mosaic_0001>
module attributes {stable_mosaic.version = 11 : i64} {
  func.func @_embed_kernel(%arg0: i32, %arg1: memref<1x4x256xbf16, #tpu.memory_space<vmem>>, %arg2: memref<256x32xbf16, #tpu.memory_space<vmem>>, %arg3: memref<4x32xf32, #tpu.memory_space<vmem>>, %arg4: memref<2x32xf32, #tpu.memory_space<vmem>>, %arg5: memref<1x6x32xf32, #tpu.memory_space<vmem>>) attributes {dimension_semantics = [#tpu.dimension_semantics<parallel>], iteration_bounds = array<i64: 2>, scalar_prefetch = 0 : i64, scratch_operands = 0 : i64, tpu.core_type = #tpu.core_type<tc>, window_params = [{transform_indices = @transform_0, window_bounds = array<i64: 1, 4, 256>}, {pipeline_mode = #tpu.pipeline_mode<synchronous>, transform_indices = @transform_1, window_bounds = array<i64: 256, 32>}, {pipeline_mode = #tpu.pipeline_mode<synchronous>, transform_indices = @transform_2, window_bounds = array<i64: 4, 32>}, {pipeline_mode = #tpu.pipeline_mode<synchronous>, transform_indices = @transform_3, window_bounds = array<i64: 2, 32>}, {transform_indices = @transform_4, window_bounds = array<i64: 1, 6, 32>}]} {
    %c0 = arith.constant 0 : index
    %c0_0 = arith.constant 0 : index
    %0 = vector.load %arg4[%c0, %c0_0] : memref<2x32xf32, #tpu.memory_space<vmem>>, vector<2x32xf32>
    %c0_1 = arith.constant 0 : index
    %c0_2 = arith.constant 0 : index
    %1 = vector.load %arg2[%c0_1, %c0_2] : memref<256x32xbf16, #tpu.memory_space<vmem>>, vector<256x32xbf16>
    %c0_3 = arith.constant 0 : index
    %c0_4 = arith.constant 0 : index
    %2 = vector.load %arg3[%c0_3, %c0_4] : memref<4x32xf32, #tpu.memory_space<vmem>>, vector<4x32xf32>
    %c0_5 = arith.constant 0 : index
    %c0_6 = arith.constant 0 : index
    %c0_7 = arith.constant 0 : index
    %3 = vector.load %arg1[%c0_5, %c0_6, %c0_7] : memref<1x4x256xbf16, #tpu.memory_space<vmem>>, vector<1x4x256xbf16>
    %4 = vector.shape_cast %3 : vector<1x4x256xbf16> to vector<4x256xbf16>
    %cst = arith.constant dense<0.000000e+00> : vector<4x32xf32>
    %5 = tpu.matmul %4, %1, %cst {dimension_numbers = #tpu.dot_dimension_numbers<[1], [0], [0], [1], [0, 0, 1, 1], [], []>} : vector<4x256xbf16>, vector<256x32xbf16>, vector<4x32xf32> -> vector<4x32xf32>
    %c0_8 = arith.constant 0 : index
    %c0_9 = arith.constant 0 : index
    %c0_10 = arith.constant 0 : index
    %6 = vector.load %arg5[%c0_8, %c0_9, %c0_10] : memref<1x6x32xf32, #tpu.memory_space<vmem>>, vector<1x2x32xf32>
    %7 = vector.shape_cast %6 : vector<1x2x32xf32> to vector<2x32xf32>
    %8 = vector.shape_cast %0 : vector<2x32xf32> to vector<1x2x32xf32>
    tpu.vector_store %arg5[%c0_8, %c0_9, %c0_10], %8 {strides = array<i32>} : memref<1x6x32xf32, #tpu.memory_space<vmem>>, vector<1x2x32xf32>,
    %9 = arith.addf %5, %2 : vector<4x32xf32>
    %c0_11 = arith.constant 0 : index
    %c2 = arith.constant 2 : index
    %c0_12 = arith.constant 0 : index
    %10 = vector.load %arg5[%c0_11, %c2, %c0_12] : memref<1x6x32xf32, #tpu.memory_space<vmem>>, vector<1x4x32xf32>
    %11 = vector.shape_cast %10 : vector<1x4x32xf32> to vector<4x32xf32>
    %12 = vector.shape_cast %9 : vector<4x32xf32> to vector<1x4x32xf32>
    tpu.vector_store %arg5[%c0_11, %c2, %c0_12], %12 {strides = array<i32>} : memref<1x6x32xf32, #tpu.memory_space<vmem>>, vector<1x4x32xf32>,
    return
  }
  func.func @transform_0(%arg0: i32) -> (i32, i32, i32) {
    %c0_i32 = arith.constant 0 : i32
    %c0_i32_0 = arith.constant 0 : i32
    %c0_i32_1 = arith.constant 0 : i32
    return %arg0, %c0_i32, %c0_i32_0 : i32, i32, i32
  }
  func.func @transform_1(%arg0: i32) -> (i32, i32) {
    %c0_i32 = arith.constant 0 : i32
    %c0_i32_0 = arith.constant 0 : i32
    %c0_i32_1 = arith.constant 0 : i32
    return %c0_i32, %c0_i32_0 : i32, i32
  }
  func.func @transform_2(%arg0: i32) -> (i32, i32) {
    %c0_i32 = arith.constant 0 : i32
    %c0_i32_0 = arith.constant 0 : i32
    %c0_i32_1 = arith.constant 0 : i32
    return %c0_i32, %c0_i32_0 : i32, i32
  }
  func.func @transform_3(%arg0: i32) -> (i32, i32) {
    %c0_i32 = arith.constant 0 : i32
    %c0_i32_0 = arith.constant 0 : i32
    %c0_i32_1 = arith.constant 0 : i32
    return %c0_i32, %c0_i32_0 : i32, i32
  }
  func.func @transform_4(%arg0: i32) -> (i32, i32, i32) {
    %c0_i32 = arith.constant 0 : i32
    %c0_i32_0 = arith.constant 0 : i32
    %c0_i32_1 = arith.constant 0 : i32
    return %arg0, %c0_i32, %c0_i32_0 : i32, i32, i32
  }
}

</mosaic_0001>

<bundles_post_ra>
// kernel: deit_embeddings.1
= control target key start
LH: loop header
LB: loop body
LE: loop exit
PB: predicated region body
PF: predicated region fallthrough
CT: control target
= control target key end

     0   :  { %s543_s15 = smov 0   ;;  %s618_s0 = inlined_call_operand.vmem [shape: bf16[2,4,256], index: 0, kind: input, shape index: {}]   ;;  %s619_s1 = inlined_call_operand.vmem [shape: bf16[256,32], index: 1, kind: input, shape index: {}]   ;;  %s620_s2 = inlined_call_operand.vmem [shape: f32[4,32], index: 2, kind: input, shape index: {}]   ;;  %s621_s3 = inlined_call_operand.vmem [shape: f32[2,32], index: 3, kind: input, shape index: {}]   ;;  %s622_s4 = inlined_call_operand.vmem [shape: f32[2,6,32], index: 4, kind: output, shape index: {}]  }
   0x1 LB: > { %s436_s16 = sadd.s32 4294967295, %s516_s15   ;;  %p440_p0 = scmp.ge.s32.totalorder %s516_s15, 1  ;;  %s516_s15 = sphi %s543_s15, %s14_s15  }
   0x2   : > { %p162_p1 = scmp.lt.s32.totalorder %s516_s15, 3 }
   0x4   : > { %p163_p2 = pnand %p440_p0, %p162_p1 }
   0x5   : > { %v494_v0 = vld [vmem:[%s619_s1 + $0x40] sm:$0xff] (!%p163_p2)   ;;  %v496_v2 = vld [vmem:[%s619_s1 + $0x48] sm:$0xff] (!%p163_p2)   ;;  %p187_p3 = scmp.lt.s32.totalorder (!%p163_p2), %s436_s16, 1  ;;  %v498_v4 = vld [vmem:[%s619_s1 + $0x50] sm:$0xff] (!%p163_p2)   ;;  %vm232_vm0 = vcmask (!%p163_p2), 254976   ;;  %vm381_vm1 = vcmask (!%p163_p2), 257024  }
   0x6   : > { %166 = sbr.rel (%p163_p2) target bundleno = 256 (0x100), region = 36  ;;  %v495_v1 = vld [vmem:[%s619_s1] sm:$0xff] (!%p163_p2)   ;;  %464 = vmatprep.subr.bf16.mxu0 (!%p163_p2), %v494_v0  ;;  %v497_v3 = vld [vmem:[%s619_s1 + $0x8] sm:$0xff] (!%p163_p2)   ;;  %v499_v5 = vld [vmem:[%s619_s1 + $0x10] sm:$0xff] (!%p163_p2)  }
   0x7   : > { %465 = vmatpush3.bf16.msra.mxu0 (!%p163_p2), %v495_v1  ;;  %v500_v6 = vld [vmem:[%s619_s1 + $0x58] sm:$0xff] (!%p163_p2)   ;;  %v502_v8 = vld [vmem:[%s619_s1 + $0x60] sm:$0xff] (!%p163_p2)   ;;  %v504_v10 = vld [vmem:[%s619_s1 + $0x68] sm:$0xff] (!%p163_p2)  }
   0x8   : > { %466 = vmatprep.subr.bf16.mxu0 (!%p163_p2), %v496_v2  ;;  %v501_v7 = vld [vmem:[%s619_s1 + $0x18] sm:$0xff] (!%p163_p2)   ;;  %v503_v9 = vld [vmem:[%s619_s1 + $0x20] sm:$0xff] (!%p163_p2)   ;;  %v505_v14 = vld [vmem:[%s619_s1 + $0x28] sm:$0xff] (!%p163_p2)  }
   0x9   : > { %v197_v11 = vld [vmem:[%s621_s3] sm:$0x3] (!%p163_p2)  ;;  %v506_v15 = vld [vmem:[%s619_s1 + $0x70] sm:$0xff] (!%p163_p2)   ;;  %v508_v17 = vld [vmem:[%s619_s1 + $0x78] sm:$0xff] (!%p163_p2)  }
   0xa   : > { %v507_v16 = vld [vmem:[%s619_s1 + $0x30] sm:$0xff] (!%p163_p2)   ;;  %v509_v18 = vld [vmem:[%s619_s1 + $0x38] sm:$0xff] (!%p163_p2)   ;;  %v230_v20 = vld [vmem:[%s620_s2] sm:$0xf] (!%p163_p2) }
   0xb   : > { %467 = vmatpush3.bf16.msra.mxu0 (!%p163_p2), %v497_v3 }
   0xc   : > { %468 = vmatprep.subr.bf16.mxu0 (!%p163_p2), %v498_v4 }
   0xd   : > { %s624_s16 = smov (!%p187_p3, %s436_s16), 1 }
   0xe   : > { %s463_s5 = sshll.u32 %s624_s16, 2  ;;  %s443_s8 = sshll.u32 %s624_s16, 3 }
   0xf   : > { %469 = vmatpush3.bf16.msra.mxu0 %v499_v5  ;;  %s191_s13 = scalar_lea.vmem %s618_s0, %s463_s5  ;;  %s587_s20 = scalar_lea.vmem %s622_s4, %s443_s8 }
  0x10   : > { %470 = vmatprep.subr.bf16.mxu0 %v500_v6  ;;  %v444_v12 = vld.sshfl [vmem:[%s191_s13] sm:$0x33 pattern:$0x76325410]  ;;  %233 = vst.msk [vmem:[%s587_s20] sm:$0x3] %vm232_vm0, %v197_v11 }
  0x11   : > { %v242_v13 = vcombine.high %v444_v12, %v444_v12 }
  0x13   : > { %471 = vmatpush3.bf16.msra.mxu0 %v501_v7  ;;  %373 = vmatprep.mubr.bf16.mxu0 %v242_v13 }
  0x14   : > { %472 = vmatprep.subr.bf16.mxu0 %v502_v8 }
  0x17   : > { %473 = vmatpush3.bf16.msra.mxu0 %v503_v9 }
  0x18   : > { %474 = vmatprep.subr.bf16.mxu0 %v504_v10 }
  0x1b   : > { %475 = vmatpush3.bf16.msra.mxu0 %v505_v14 }
  0x1c   : > { %476 = vmatprep.subr.bf16.mxu0 %v506_v15 }
  0x1f   : > { %477 = vmatpush3.bf16.msra.mxu0 %v507_v16 }
  0x20   : > { %478 = vmatprep.subr.bf16.mxu0 %v508_v17 }
  0x23   : > { %479 = vmatpush3.bf16.msra.mxu0 %v509_v18 }
  0x26   : > { %374 = vmatmul.mubr.bf16.vlgmr.msra.gmra.mrb[0].mxu0 %v444_v12 }
  0xf9   : > { %v480_v19 = vpop.f32.mrb[0].mxu0 }
  0xfa   : > { %v481_v21 = vpop.f32.mrb[1].mxu0 }
  0xfb   : > { %v482_v22 = vadd.f32 %v481_v21, %v480_v19  ;;  %v483_v23 = vpop.f32.mrb[2].mxu0 }
  0xfc   : > { %v484_v24 = vpop.f32.mrb[3].mxu0 }
  0xfd   : > { %v376_v25 = vadd.f32 %v482_v22, %v230_v20 }
  0xff   : > { %382 = vst.msk [vmem:[%s587_s20 + $0x2] sm:$0xf] %vm381_vm1, %v376_v25 }
 0x100 PF: > { %s14_s15 = sadd.s32 1, %s516_s15  }
 0x101   : > { %p11_p4 = scmp.ge.s32.totalorder %s14_s15, 4  }
 0x103   :  { %13 = sbr.rel (!%p11_p4) target bundleno = 1 (0x1), region = 66 }

</bundles_post_ra>
